<compile_context>
chip_gen: v5e
topology: v5e:2x2
jax: 0.10.0
libtpu: 0.0.40
codegen_flags: <defaults>
</compile_context>

<pallas_src>
import functools

import jax
import jax.numpy as jnp
from jax.experimental import pallas as pl
from jax.experimental.pallas import tpu as pltpu


def _round_up(n: int, m: int) -> int:
    return ((n + m - 1) // m) * m


def _make_double_linear_kernel(activation):
    def kernel(x_ref, w_ref, o_ref):
        # Explicit cast policy: feed the MXU f32 (no-op for f32 inputs),
        # accumulate in f32, cast back on store.
        x = x_ref[...].astype(jnp.float32)
        w = w_ref[...]
        z = jnp.dot(x, w, preferred_element_type=jnp.float32)
        o_ref[...] = activation(z).astype(o_ref.dtype)

    return kernel


def double_linear(all_x, weights, activation=jax.nn.sigmoid):
    """Fused DoubleLinear forward.

    all_x:   sequence of arrays x_i with shape (B, f_i)
    weights: sequence of arrays W_i with shape (out_features, f_i)
             (PyTorch nn.Linear layout; no bias)
    Returns activation(sum_i x_i @ W_i^T) with shape (B, out_features).
    """
    n = len(all_x)
    assert n == len(weights) and n >= 1, "need one weight per input"
    B = all_x[0].shape[0]
    out_features = weights[0].shape[0]
    for x_i, w_i in zip(all_x, weights):
        assert x_i.shape[0] == B, "all inputs must share the batch dim"
        assert w_i.shape == (out_features, x_i.shape[1]), (
            f"weight shape {w_i.shape} incompatible with input {x_i.shape}"
        )
    out_dtype = all_x[0].dtype

    # --- Fuse the N linears into a single matmul -----------------------------
    # Stack pre-transposed weights along the contraction axis.
    w_packed = jnp.concatenate(
        [w_i.T.astype(jnp.float32) for w_i in weights], axis=0
    )  # (F_total, out_features)
    x_all = jnp.concatenate(all_x, axis=-1)  # (B, F_total)

    # --- Pad to hardware-friendly shapes --------------------------------------
    # Lane-dense output (multiple of 128) via zero weight columns; full sublane
    # use (batch multiple of 8) via zero input rows.  Padding is sliced off.
    Bp = _round_up(B, 8)
    Np = _round_up(out_features, 128)
    if Np != out_features:
        w_packed = jnp.pad(w_packed, ((0, 0), (0, Np - out_features)))
    if Bp != B:
        x_all = jnp.pad(x_all, ((0, Bp - B), (0, 0)))

    kernel = _make_double_linear_kernel(activation)
    out_padded = pl.pallas_call(
        kernel,
        out_shape=jax.ShapeDtypeStruct((Bp, Np), out_dtype),
        in_specs=[
            pl.BlockSpec(memory_space=pltpu.MemorySpace.VMEM),  # x_all
            pl.BlockSpec(memory_space=pltpu.MemorySpace.VMEM),  # w_packed
        ],
        out_specs=pl.BlockSpec(memory_space=pltpu.MemorySpace.VMEM),
    )(x_all, w_packed)

    return out_padded[:B, :out_features]


def double_linear_ref(all_x, weights, activation=jax.nn.sigmoid):
    """Pure-JAX reference mirroring the PyTorch module."""
    z = functools.reduce(
        lambda acc, xw: acc + xw[0].astype(jnp.float32) @ xw[1].T.astype(jnp.float32),
        zip(all_x, weights),
        jnp.zeros((all_x[0].shape[0], weights[0].shape[0]), jnp.float32),
    )
    return activation(z).astype(all_x[0].dtype)


if __name__ == "__main__":
    # Small shapes consistent with the module: two inputs of different widths.
    batch = 2
    in_features = (32, 48)
    out_features = 32

    key = jax.random.PRNGKey(0)
    keys = jax.random.split(key, 2 * len(in_features))

    all_x = [
        jax.random.normal(keys[i], (batch, f_i), dtype=jnp.float32)
        for i, f_i in enumerate(in_features)
    ]
    # nn.Linear-style init: U(-1/sqrt(fan_in), 1/sqrt(fan_in)), PyTorch layout
    # (out_features, in_features).
    weights = []
    for i, f_i in enumerate(in_features):
        bound = 1.0 / float(jnp.sqrt(jnp.float32(f_i)))
        weights.append(
            jax.random.uniform(
                keys[len(in_features) + i],
                (out_features, f_i),
                minval=-bound,
                maxval=bound,
                dtype=jnp.float32,
            )
        )

    out = double_linear(all_x, weights)
    jax.block_until_ready(out)

    ref = double_linear_ref(all_x, weights)
    assert out.shape == (batch, out_features)
    assert jnp.allclose(out, ref, atol=1e-5, rtol=1e-5), (
        f"max abs err {jnp.max(jnp.abs(out - ref))}"
    )

    print("KERNEL_OK")
</pallas_src>

<mosaic_0001>
module attributes {stable_mosaic.version = 11 : i64} {
  func.func @kernel(%arg0: memref<8x80xf32, #tpu.memory_space<vmem>>, %arg1: memref<80x128xf32, #tpu.memory_space<vmem>>, %arg2: memref<8x128xf32, #tpu.memory_space<vmem>>) attributes {dimension_semantics = [], scalar_prefetch = 0 : i64, scratch_operands = 0 : i64, tpu.core_type = #tpu.core_type<tc>} {
    %c0 = arith.constant 0 : index
    %c0_0 = arith.constant 0 : index
    %0 = vector.load %arg0[%c0, %c0_0] : memref<8x80xf32, #tpu.memory_space<vmem>>, vector<8x80xf32>
    %c0_1 = arith.constant 0 : index
    %c0_2 = arith.constant 0 : index
    %1 = vector.load %arg1[%c0_1, %c0_2] : memref<80x128xf32, #tpu.memory_space<vmem>>, vector<80x128xf32>
    %cst = arith.constant dense<0.000000e+00> : vector<8x128xf32>
    %2 = tpu.matmul %0, %1, %cst {dimension_numbers = #tpu.dot_dimension_numbers<[1], [0], [0], [1], [0, 0, 1, 1], [], []>} : vector<8x80xf32>, vector<80x128xf32>, vector<8x128xf32> -> vector<8x128xf32>
    %3 = arith.negf %2 : vector<8x128xf32>
    %4 = math.exp %3 : vector<8x128xf32>
    %cst_3 = arith.constant 1.000000e+00 : f32
    %5 = vector.broadcast %cst_3 : f32 to vector<8x128xf32>
    %6 = arith.addf %5, %4 : vector<8x128xf32>
    %7 = arith.divf %5, %6 : vector<8x128xf32>
    %c0_4 = arith.constant 0 : index
    %c0_5 = arith.constant 0 : index
    %8 = vector.load %arg2[%c0_4, %c0_5] : memref<8x128xf32, #tpu.memory_space<vmem>>, vector<8x128xf32>
    tpu.vector_store %arg2[%c0_4, %c0_5], %7 {strides = array<i32>} : memref<8x128xf32, #tpu.memory_space<vmem>>, vector<8x128xf32>,
    return
  }
}

</mosaic_0001>

<bundles_post_ra>
// kernel: tpu_custom_call.1
= control target key start
LH: loop header
LB: loop body
LE: loop exit
PB: predicated region body
PF: predicated region fallthrough
CT: control target
= control target key end

     0   :  { %7 = vsyncpa [#allocation3], 0  ;;  %s233_s0 = inlined_call_operand.hbm [shape: f32[8,80], index: 0, kind: input, shape index: {}]   ;;  %s234_s1 = inlined_call_operand.hbm [shape: f32[80,128], index: 1, kind: input, shape index: {}]   ;;  %s235_s2 = inlined_call_operand.hbm [shape: f32[8,128], index: 2, kind: output, shape index: {}]  }
   0x1   :  { %8 = vsyncpa [#allocation6], 0 }
   0x2   :  { %9 = vsyncpa [#allocation4], 0  ;;  %s15_s11 = sshll.u32 %s233_s0, 4  ;;  %s204_s12 = smov [#allocation2]   ;;  %s16_s11 = int_to_ptr.hbm [resolvable:$true] %s15_s11 }
   0x3   :  { %s17_s13 = sshll.u32 %s204_s12, 4  ;;  %s25_s16 = sshll.u32 %s234_s1, 4  ;;  %s18_s13 = int_to_ptr.vmem [resolvable:$true] %s17_s13  ;;  %s26_s16 = int_to_ptr.hbm [resolvable:$true] %s25_s16 }
   0x4   :  { %20 = dma.hbm_to_vmem [thread:$0]  %s16_s11, 128, %s18_s13, [#allocation3]  }
   0x5   :  { %s205_s17 = smov [#allocation5]   ;;  %s206_s19 = smov 128  }
   0x6   :  { %s27_s18 = sshll.u32 %s205_s17, 4  ;;  %s207_s20 = smov 8   ;;  %s28_s18 = int_to_ptr.vmem [resolvable:$true] %s27_s18 }
   0x7   :  { %33 = dma.hbm_to_vmem [thread:$0]  %s26_s16, 1280, %s28_s18, [#allocation6], %s206_s19, %s206_s19, %s207_s20  }
   0x8   :  { %198 = dma.done.wait [#allocation3], 128  }
   0x9   :  { %199 = vsyncadd [#allocation3], 4294967168 }
   0xa   :  { %200 = dma.done.wait [#allocation6], 1280  }
   0xb   :  { %201 = vsyncadd [#allocation6], 4294966016  ;;  %v52_v0 = vld [vmem:[#allocation5 + $0x48] sm:$0xff]  ;;  %v51_v1 = vld [vmem:[#allocation5 + $0x40] sm:$0xff]  ;;  %vm53_vm0 = vcmask 654336   ;;  %s208_s0 = smov [#allocation7]  }
   0xc   :  { %63 = vmatpush.msra.mxu0 %v52_v0  ;;  %v50_v2 = vld [vmem:[#allocation5 + $0x38] sm:$0xff]  ;;  %v49_v3 = vld [vmem:[#allocation5 + $0x30] sm:$0xff]  ;;  %v48_v4 = vld [vmem:[#allocation5 + $0x28] sm:$0xff]  ;;  %s102_s1 = sshll.u32 %s208_s0, 4  ;;  %s104_s23 = sshll.u32 %s235_s2, 4  ;;  %s103_s1 = int_to_ptr.vmem [resolvable:$true] %s102_s1  ;;  %s105_s23 = int_to_ptr.hbm [resolvable:$true] %s104_s23 }
   0xd   :  { %v47_v5 = vld [vmem:[#allocation5 + $0x20] sm:$0xff]  ;;  %v46_v6 = vld [vmem:[#allocation5 + $0x18] sm:$0xff]  ;;  %v45_v7 = vld [vmem:[#allocation5 + $0x10] sm:$0xff] }
   0xe   :  { %64 = vmatpush.msra.mxu0 %v51_v1  ;;  %v44_v8 = vld [vmem:[#allocation5 + $0x8] sm:$0xff]  ;;  %v43_v9 = vld [vmem:[#allocation5] sm:$0xff]  ;;  %v42_v10 = vld [vmem:[#allocation2] sm:$0xff] }
  0x10   :  { %65 = vmatpush.msra.mxu0 %v50_v2 }
  0x12   :  { %66 = vmatpush.msra.mxu0 %v49_v3 }
  0x14   :  { %67 = vmatpush.msra.mxu0 %v48_v4 }
  0x16   :  { %68 = vmatpush.msra.mxu0 %v47_v5 }
  0x18   :  { %69 = vmatpush.msra.mxu0 %v46_v6 }
  0x1a   :  { %70 = vmatpush.msra.mxu0 %v45_v7 }
  0x1c   :  { %71 = vmatpush.msra.mxu0 %v44_v8 }
  0x1e   :  { %72 = vmatpush.msra.mxu0 %v43_v9 }
  0x1f   :  { %115 = vmatmul.msk.f32.vlgmr.msra.gmra.mxu0 %vm53_vm0, %v42_v10 }
  0x9c   :  { %v74_v11 = vpop.f32.mrf.mxu0 }
  0x9d   :  { %v116_v12 = vmul.f32 -1.442695, %v74_v11 }
  0x9f   :  { %122 = vpow2.f32 %v116_v12 }
  0xa5   :  { %v123_v13 = vpop.eup %122 }
  0xa6   :  { %v80_v14 = vadd.f32 1.0, %v123_v13 }
  0xa8   :  { %124 = vrcp.f32 %v80_v14  ;;  %v92_v18 = vand.u32 2147483648, %v80_v14  ;;  %v90_v20 = vand.u32 2147483647, %v80_v14  ;;  %vm86_vm2 = vweird.f32 %v80_v14 }
  0xaa   :  { %v93_v22 = vor.u32 1.1754944e-38, %v92_v18  ;;  %vm91_vm4 = vcmp.eq.f32.partialorder %v90_v20, 8.507059e+37 }
  0xae   :  { %v125_v15 = vpop.eup %124 }
  0xaf   :  { %v82_v16 = vmul.f32 %v125_v15, %v80_v14  ;;  %vm87_vm1 = vweird.f32 %v125_v15 }
  0xb0   :  { %vm88_vm3 = vmor %vm86_vm2, %vm87_vm1 }
  0xb1   :  { %v83_v17 = vsub.f32 1.0, %v82_v16 }
  0xb3   :  { %v84_v19 = vmul.f32 %v125_v15, %v83_v17 }
  0xb5   :  { %v85_v21 = vadd.f32 %v125_v15, %v84_v19 }
  0xb7   :  { %v89_v23 = vsel %vm88_vm3, %v125_v15, %v85_v21 }
  0xb8   :  { %v94_v24 = vsel %vm91_vm4, %v93_v22, %v89_v23 }
  0xb9   :  { %96 = vst [vmem:[#allocation7] sm:$0xff] %v94_v24 }
  0xba   :  { %107 = dma.vmem_to_hbm [thread:$0]  %s103_s1, 128, %s105_s23, [#allocation4]  }
  0xbb   :  { %202 = dma.done.wait [#allocation4], 128  }
  0xbc   :  { %203 = vsyncadd [#allocation4], 4294967168 }
  0xbd   :  { %112 = vsyncpa [#allocation3], 1 }
  0xbe   :  { %113 = vsyncpa [#allocation6], 1 }
  0xbf   :  { %114 = vsyncpa [#allocation4], 1 }

</bundles_post_ra>
